<compile_context>
chip_gen: v5e
topology: v5e:2x2
jax: 0.10.0
libtpu: 0.0.40
codegen_flags: <defaults>
</compile_context>

<pallas_src>
import math

import jax
import jax.numpy as jnp
from jax.experimental import pallas as pl
from jax.experimental.pallas import tpu as pltpu


# ----------------------------------------------------------------------------
# Pallas kernel: out = x + pe  (pe already alpha-combined in the wrapper)
# ----------------------------------------------------------------------------
def _add_pe_kernel(x_ref, pe_ref, o_ref):
    # x_ref / o_ref : VMEM (Bt, L, D)   -- one coarse slab of batch rows
    # pe_ref        : VMEM (L, D)       -- combined PE, constant block index
    x = x_ref[...].astype(jnp.float32)
    pe = pe_ref[...].astype(jnp.float32)
    o_ref[...] = (x + pe[None]).astype(o_ref.dtype)


def _pick_batch_tile(B, row_bytes, target_bytes=2 << 20):
    """Largest divisor of B whose slab is <= target_bytes.

    Keeps >= 2 grid steps when B >= 2 so both TensorCores on v7x get work
    (dimension_semantics=("parallel",) shards the grid across cores)."""
    max_rows = max(1, target_bytes // max(1, row_bytes))
    if B >= 2:
        max_rows = min(max_rows, (B + 1) // 2)
    best = 1
    for d in range(1, B + 1):
        if B % d == 0 and d <= max_rows:
            best = d
    return best


def positional_encoding_forward(x, global_pe, week_pe, month_pe,
                                alpha_g, alpha_w, alpha_m):
    """x: (B, L, D).  pe buffers: (max_len, D).  alphas: (1,) params.

    Inference-mode forward (nn.Dropout is identity).
    """
    B, L, D = x.shape
    max_len = global_pe.shape[0]
    assert L <= max_len, f"seq_len {L} exceeds max_len {max_len}"

    # Combine the three alpha-weighted tables once in the wrapper (tiny (L, D)
    # op, amortized over B) — the kernel then does a single vadd per element.
    pe = (alpha_g[0] * global_pe[:L]
          + alpha_w[0] * week_pe[:L]
          + alpha_m[0] * month_pe[:L]).astype(jnp.float32)

    # Lane-density guard: keep the last (lane) dim a multiple of 128.
    D_pad = ((D + 127) // 128) * 128
    if D_pad != D:
        x_in = jnp.pad(x, ((0, 0), (0, 0), (0, D_pad - D)))
        pe_in = jnp.pad(pe, ((0, 0), (0, D_pad - D)))
    else:
        x_in, pe_in = x, pe

    # Coarsen the grid: Bt batch rows per step, targeting ~2 MiB slabs.
    row_bytes = L * D_pad * jnp.dtype(x.dtype).itemsize
    Bt = _pick_batch_tile(B, row_bytes)
    grid = (B // Bt,)

    out = pl.pallas_call(
        _add_pe_kernel,
        grid=grid,
        out_shape=jax.ShapeDtypeStruct((B, L, D_pad), x.dtype),
        in_specs=[
            pl.BlockSpec((Bt, L, D_pad), lambda b: (b, 0, 0)),   # x slab
            pl.BlockSpec((L, D_pad), lambda b: (0, 0)),          # pe, resident
        ],
        out_specs=pl.BlockSpec((Bt, L, D_pad), lambda b: (b, 0, 0)),
        compiler_params=pltpu.CompilerParams(
            dimension_semantics=("parallel",)),
    )(x_in, pe_in)

    if D_pad != D:
        out = out[..., :D]
    return out


# ----------------------------------------------------------------------------
# Buffer construction — mirrors the PyTorch __init__ exactly.
# ----------------------------------------------------------------------------
def make_pe_buffers(hidden_dim, max_len=400):
    position = jnp.arange(max_len, dtype=jnp.float32)[:, None]
    div_term = jnp.exp(jnp.arange(0, hidden_dim, 2, dtype=jnp.float32)
                       * (-math.log(10000.0) / hidden_dim))
    pe = jnp.zeros((max_len, hidden_dim), jnp.float32)
    pe = pe.at[:, 0::2].set(jnp.sin(position * div_term))
    pe = pe.at[:, 1::2].set(jnp.cos(position * div_term))

    wm_div = jnp.exp(jnp.arange(0, hidden_dim, 2, dtype=jnp.float32)
                     * (-math.log(100.0) / hidden_dim))
    week_position = (jnp.arange(max_len) % 7).astype(jnp.float32)[:, None]
    wpe = jnp.zeros((max_len, hidden_dim), jnp.float32)
    wpe = wpe.at[:, 0::2].set(jnp.sin(week_position * wm_div))
    wpe = wpe.at[:, 1::2].set(jnp.cos(week_position * wm_div))

    month_position = (jnp.arange(max_len) % 30).astype(jnp.float32)[:, None]
    mpe = jnp.zeros((max_len, hidden_dim), jnp.float32)
    mpe = mpe.at[:, 0::2].set(jnp.sin(month_position * wm_div))
    mpe = mpe.at[:, 1::2].set(jnp.cos(month_position * wm_div))
    return pe, wpe, mpe


# ----------------------------------------------------------------------------
if __name__ == "__main__":
    # Small shapes consistent with the module; D=128 keeps stores lane-dense.
    B, L, D = 2, 16, 128
    MAX_LEN = 400

    key = jax.random.PRNGKey(0)
    x = jax.random.normal(key, (B, L, D), jnp.float32)

    global_pe, week_pe, month_pe = make_pe_buffers(D, MAX_LEN)
    # alpha_g / alpha_w / alpha_m are nn.Parameter(torch.ones(1)).
    alpha_g = jnp.ones((1,), jnp.float32)
    alpha_w = jnp.ones((1,), jnp.float32)
    alpha_m = jnp.ones((1,), jnp.float32)

    fwd = jax.jit(positional_encoding_forward)
    out = jax.block_until_ready(
        fwd(x, global_pe, week_pe, month_pe, alpha_g, alpha_w, alpha_m))

    # Pure-JAX reference (eval mode: dropout = identity).
    # TODO(synk): training-mode dropout (p=0.01) not implemented; eval semantics used.
    pe_ref = (alpha_g[0] * global_pe[:L] + alpha_w[0] * week_pe[:L]
              + alpha_m[0] * month_pe[:L])
    ref = x + pe_ref[None]

    assert out.shape == (B, L, D), out.shape
    assert bool(jnp.all(jnp.isfinite(out)))
    assert bool(jnp.allclose(out, ref, atol=1e-5, rtol=1e-5))
    print("KERNEL_OK")
</pallas_src>

<mosaic_0001>
module attributes {stable_mosaic.version = 11 : i64} {
  func.func @_add_pe_kernel(%arg0: i32, %arg1: memref<1x16x128xf32, #tpu.memory_space<vmem>>, %arg2: memref<16x128xf32, #tpu.memory_space<vmem>>, %arg3: memref<1x16x128xf32, #tpu.memory_space<vmem>>) attributes {dimension_semantics = [#tpu.dimension_semantics<parallel>], iteration_bounds = array<i64: 2>, scalar_prefetch = 0 : i64, scratch_operands = 0 : i64, tpu.core_type = #tpu.core_type<tc>, window_params = [{transform_indices = @transform_0, window_bounds = array<i64: 1, 16, 128>}, {pipeline_mode = #tpu.pipeline_mode<synchronous>, transform_indices = @transform_1, window_bounds = array<i64: 16, 128>}, {transform_indices = @transform_2, window_bounds = array<i64: 1, 16, 128>}]} {
    %c0 = arith.constant 0 : index
    %c0_0 = arith.constant 0 : index
    %c0_1 = arith.constant 0 : index
    %0 = vector.load %arg1[%c0, %c0_0, %c0_1] : memref<1x16x128xf32, #tpu.memory_space<vmem>>, vector<1x16x128xf32>
    %c0_2 = arith.constant 0 : index
    %c0_3 = arith.constant 0 : index
    %1 = vector.load %arg2[%c0_2, %c0_3] : memref<16x128xf32, #tpu.memory_space<vmem>>, vector<16x128xf32>
    %2 = vector.shape_cast %1 : vector<16x128xf32> to vector<1x16x128xf32>
    %3 = arith.addf %0, %2 : vector<1x16x128xf32>
    %c0_4 = arith.constant 0 : index
    %c0_5 = arith.constant 0 : index
    %c0_6 = arith.constant 0 : index
    %4 = vector.load %arg3[%c0_4, %c0_5, %c0_6] : memref<1x16x128xf32, #tpu.memory_space<vmem>>, vector<1x16x128xf32>
    tpu.vector_store %arg3[%c0_4, %c0_5, %c0_6], %3 {strides = array<i32>} : memref<1x16x128xf32, #tpu.memory_space<vmem>>, vector<1x16x128xf32>,
    return
  }
  func.func @transform_0(%arg0: i32) -> (i32, i32, i32) {
    %c0_i32 = arith.constant 0 : i32
    %c0_i32_0 = arith.constant 0 : i32
    %c0_i32_1 = arith.constant 0 : i32
    return %arg0, %c0_i32, %c0_i32_0 : i32, i32, i32
  }
  func.func @transform_1(%arg0: i32) -> (i32, i32) {
    %c0_i32 = arith.constant 0 : i32
    %c0_i32_0 = arith.constant 0 : i32
    %c0_i32_1 = arith.constant 0 : i32
    return %c0_i32, %c0_i32_0 : i32, i32
  }
  func.func @transform_2(%arg0: i32) -> (i32, i32, i32) {
    %c0_i32 = arith.constant 0 : i32
    %c0_i32_0 = arith.constant 0 : i32
    %c0_i32_1 = arith.constant 0 : i32
    return %arg0, %c0_i32, %c0_i32_0 : i32, i32, i32
  }
}

</mosaic_0001>

<bundles_post_ra>
// kernel: positional_encoding_forward.1
= control target key start
LH: loop header
LB: loop body
LE: loop exit
PB: predicated region body
PF: predicated region fallthrough
CT: control target
= control target key end

     0   :  { %7 = vsyncpa [#allocation3], 0  ;;  %s449_s0 = inlined_call_operand.vmem [shape: f32[2,16,128], index: 0, kind: input, shape index: {}]   ;;  %s450_s1 = inlined_call_operand.vmem [shape: f32[16,128], index: 1, kind: input, shape index: {}]   ;;  %s451_s2 = inlined_call_operand.hbm [shape: f32[2,16,128], index: 2, kind: output, shape index: {}]  }
   0x1   :  { %9 = vsyncpa [#allocation3 + $0x1], 0  ;;  %s364_s9 = smov 0   ;;  %s366_s10 = smov 0  }
   0x2   :  { %s368_s11 = smov 0   ;;  %s370_s12 = smov 0  }
   0x3 LB: > { %s227_s13 = sadd.s32 4294967295, %s345_s12   ;;  %s228_s14 = sadd.s32 4294967294, %s345_s12   ;;  %s345_s12 = sphi %s370_s12, %s457_s12   ;;  %s341_s11 = sphi %s368_s11, %s456_s11   ;;  %s337_s10 = sphi %s366_s10, %s455_s10   ;;  %s333_s9 = sphi %s364_s9, %s454_s9  }
   0x4   : > { %s387_s15 = sadd.s32 1, %s345_s12   ;;  %s69_s16 = sadd.s32 1, %s341_s11 }
   0x5   : > { %s66_s17 = ssub.s32 %s345_s12, %s387_s15  ;;  %p79_p0 = scmp.ne.s32.totalorder %s341_s11, %s337_s10 }
   0x6   : > { %p67_p1 = scmp.eq.s32.totalorder %s66_s17, 0  ;;  %p80_p2 = scmp.eq.s32.totalorder %s227_s13, 1 }
   0x7   : > { %p85_p3 = scmp.ne.s32.totalorder %s337_s10, %s333_s9  ;;  %p86_p4 = scmp.eq.s32.totalorder %s228_s14, 1 }
   0x8   : > { %s397_s18 = scalar_select %p67_p1, %s341_s11, %s69_s16  }
   0x9   : > { %p399_p5 = por %p80_p2, %p79_p0  ;;  %p403_p6 = por %p86_p4, %p85_p3 }
   0xa   : > { %p231_p7 = scmp.ge.s32.totalorder %s345_s12, 1  ;;  %p115_p8 = scmp.lt.s32.totalorder %s345_s12, 3 }
   0xc   : > { %p116_p9 = pnand %p231_p7, %p115_p8 }
   0xd   : > { %s134_s21 = sand.u32 (!%p116_p9), 1, %s337_s10   ;;  %p137_p10 = scmp.lt.s32.totalorder (!%p116_p9), %s227_s13, 1 }
   0xe   : > { %119 = sbr.rel (%p116_p9) target bundleno = 32 (0x20), region = 28  ;;  %s232_s22 = sshll.u32 (!%p116_p9), %s134_s21, 4 }
   0xf   : > { %s241_s23 = sshll.u32 (!%p116_p9), %s227_s13, 4  ;;  %s136_s30 = scalar_lea.vmem (!%p116_p9), [#allocation2], %s232_s22 }
  0x10   : > { %s162_s26 = scalar_lea.hbm (!%p116_p9), %s451_s2, %s241_s23  ;;  %s163_s3 = sshll.u32 (!%p116_p9), %s136_s30, 4  ;;  %s164_s3 = int_to_ptr.vmem [resolvable:$true] %s163_s3 }
  0x11   : > { %s165_s14 = sshll.u32 (!%p116_p9), %s162_s26, 4  ;;  %s303_s24 = scalar_lea.hbm (!%p116_p9), %s451_s2, 32  ;;  %s166_s14 = int_to_ptr.hbm [resolvable:$true] %s165_s14 }
  0x12   : > { %s297_s16 = sshra.s32 (!%p116_p9), %s166_s14, 4  ;;  %s298_s16 = int_to_ptr.hbm [resolvable:$true] %s297_s16 }
  0x13   : > { %s459_s13 = smov (!%p137_p10, %s227_s13), 1  ;;  %v144_v0 = vld [vmem:[%s450_s1] sm:$0xff]  ;;  %v145_v1 = vld [vmem:[%s450_s1 + $0x8] sm:$0xff]  ;;  %s299_s17 = scalar_lea.hbm %s298_s16, 16 }
  0x14   : > { %s240_s27 = sshll.u32 %s459_s13, 4  ;;  %s151_s13 = scalar_lea.sflag [#allocation3], %s134_s21 }
  0x15   : > { %s141_s8 = scalar_lea.vmem %s449_s0, %s240_s27  ;;  %p300_p11 = scmp.ne.s32.totalorder %s298_s16, %s299_s17 }
  0x16   : > { %v142_v2 = vld [vmem:[%s141_s8] sm:$0xff]  ;;  %v143_v3 = vld [vmem:[%s141_s8 + $0x8] sm:$0xff]  ;;  %p304_p0 = scmp.lt.s32.totalorder %s298_s16, %s451_s2  ;;  %p305_p1 = scmp.lt.s32.totalorder %s303_s24, %s299_s17 }
  0x17   : > { %v146_v4 = vadd.f32 %v144_v0, %v142_v2  ;;  %v147_v5 = vadd.f32 %v145_v1, %v143_v3  ;;  %p301_p12 = pnand %p300_p11, %p399_p5 }
  0x18   : > { %p306_p2 = por %p305_p1, %p304_p0 }
  0x19   : > { %148 = vst [vmem:[%s136_s30] sm:$0xff] %v146_v4  ;;  %p302_p13 = pneg %p301_p12 }
  0x1a   : > { %149 = vst [vmem:[%s136_s30 + $0x8] sm:$0xff] %v147_v5 }
  0x1b   : > { %p307_p3 = pnand %p306_p2, %p302_p13 }
  0x1d   : > { %310 = shalt.err (!%p307_p3)
}
  0x1e   : > { %s347_s21 = smov 128   ;;  %s348_s27 = smov 8  }
  0x1f   : > { %242 = dma.vmem_to_hbm [thread:$0]  (%p399_p5), %s164_s3, 256, %s166_s14, %s151_s13, %s347_s21, %s347_s21, %s348_s27  }
  0x20 PF: > { %p248_p4 = scmp.ge.s32.totalorder %s345_s12, 2  ;;  %s180_s28 = sand.u32 1, %s333_s9  }
  0x21   : > { %s181_s29 = scalar_lea.sflag [#allocation3], %s180_s28 }
  0x22   : > { %p245_p7 = pnand %p248_p4, %p403_p6 }
  0x24   : > { %p246_p8 = pneg %p245_p7 }
  0x26   : > { %328 = dma.done.wait (%p246_p8), %s181_s29, 256  }
  0x27   : > { %330 = vsyncadd (%p246_p8), %s181_s29, 4294967040  ;;  %p12_p9 = scmp.ge.s32.totalorder %s387_s15, 4   ;;  %s454_s9 = smov %s337_s10 }
  0x28   : > { %s455_s10 = smov %s341_s11  ;;  %s456_s11 = smov %s397_s18 }
  0x29   : > { %s457_s12 = smov %s387_s15  ;;  %14 = sbr.rel (!%p12_p9) target bundleno = 3 (0x3), region = 63 }
  0x2e   :  { %187 = vsyncpa [#allocation3], 1 }
  0x2f   :  { %189 = vsyncpa [#allocation3 + $0x1], 1 }

</bundles_post_ra>
